<compile_context>
chip_gen: v7x
topology: tpu7x:2x2x1
jax: 0.10.0
libtpu: 0.0.40
codegen_flags: <defaults>
</compile_context>

<pallas_src>
import functools

import jax
import jax.numpy as jnp
from jax.experimental import pallas as pl
from jax.experimental.pallas import tpu as pltpu


def _round_up(v: int, mult: int) -> int:
    return ((v + mult - 1) // mult) * mult


def _pick_tb(m: int, n: int, target_rows: int = 512) -> int:
    """Pick batch-block size TB: TB divides m and (TB == m or TB % 8 == 0)."""
    want = max(1, target_rows // max(n, 1))
    divs = [d for d in range(1, m + 1)
            if m % d == 0 and (d == m or d % 8 == 0)]
    ge = [d for d in divs if d >= want]
    return min(ge) if ge else max(divs)


def _deepset_kernel(z_ref, keep_ref, w1_ref, b1_ref, w2_ref, b2_ref, o_ref,
                    *, n: int, agg: str):
    # z_ref:    (TB*n, din)   pre-concatenated [x|y] rows (compute dtype)
    # keep_ref: (TB, n)       1.0 = keep, 0.0 = masked-out (f32)
    # w1_ref:   (din, Hp)     Hp = hidden padded to 128 (compute dtype)
    # b1_ref:   (1, Hp)       f32
    # w2_ref:   (Hp, Dp)      Dp = dz padded to 128 (compute dtype)
    # b2_ref:   (1, Dp)       f32
    # o_ref:    (TB, Dp)      f32, lane-dense output block
    tb = keep_ref.shape[0]
    hp = w1_ref.shape[1]

    # Layer 1: single K=din MXU contraction over the whole block, f32 acc.
    h = jnp.dot(z_ref[...], w1_ref[...], preferred_element_type=jnp.float32)
    h = jnp.maximum(h + b1_ref[...], 0.0)            # (TB*n, Hp) f32

    # Mask (where-select, robust to inf/nan in masked rows) and pool over the
    # set dimension BEFORE layer 2 (sum commutes with the affine layer).
    keep = keep_ref[...]                              # (TB, n) f32
    h3 = h.reshape(tb, n, hp)                         # sublane split; free when n % 8 == 0
    hk = jnp.where(keep[:, :, None] > 0.0, h3, 0.0)
    pooled = jnp.sum(hk, axis=1)                      # (TB, Hp)
    cnt = jnp.sum(keep, axis=-1, keepdims=True)       # (TB, 1) kept-row count

    # Layer 2 on the pooled representation: each kept row contributes b2 once.
    out = jnp.dot(pooled.astype(w2_ref.dtype), w2_ref[...],
                  preferred_element_type=jnp.float32)
    out = out + cnt * b2_ref[...]                     # (TB, Dp)
    if agg == "mean":
        out = out / cnt                               # 0/0 -> nan, like nanmean
    o_ref[...] = out.astype(o_ref.dtype)


def init_deepset_params(key, dx, dy, hidden, dz, dtype=jnp.float32):
    """Deterministic PyTorch-Linear-style init (uniform +-1/sqrt(fan_in))."""
    k1, k2, k3, k4 = jax.random.split(key, 4)
    din = dx + dy
    lim1 = 1.0 / jnp.sqrt(jnp.float32(din))
    lim2 = 1.0 / jnp.sqrt(jnp.float32(hidden))
    w1 = jax.random.uniform(k1, (din, hidden), dtype, -lim1, lim1)
    b1 = jax.random.uniform(k2, (1, hidden), dtype, -lim1, lim1)
    w2 = jax.random.uniform(k3, (hidden, dz), dtype, -lim2, lim2)
    b2 = jax.random.uniform(k4, (1, dz), dtype, -lim2, lim2)
    return {"w1": w1, "b1": b1, "w2": w2, "b2": b2}


def deepset_forward(params, x, y, mask=None, agg: str = "sum",
                    compute_dtype=jnp.float32):
    """x: [m, n, dx], y: [m, n, dy], mask (optional bool): [m, n] -> [m, dz]."""
    assert agg in ("sum", "mean")
    m, n, dx = x.shape
    dy = y.shape[-1]
    din = dx + dy
    hidden = params["w1"].shape[1]
    dz = params["w2"].shape[1]
    assert params["w1"].shape[0] == din

    hp = _round_up(hidden, 128)
    dp = _round_up(dz, 128)

    # Pre-concat + flatten in the wrapper (free XLA layout ops) -> one big
    # lane-friendly 2D operand for the kernel.
    z = jnp.concatenate((x, y), axis=-1).reshape(m * n, din).astype(compute_dtype)

    # Zero-pad weights to 128-lane-dense shapes (biases kept in f32).
    w1 = jnp.zeros((din, hp), compute_dtype).at[:, :hidden].set(
        params["w1"].astype(compute_dtype))
    b1 = jnp.zeros((1, hp), jnp.float32).at[:, :hidden].set(
        params["b1"].reshape(1, hidden).astype(jnp.float32))
    w2 = jnp.zeros((hp, dp), compute_dtype).at[:hidden, :dz].set(
        params["w2"].astype(compute_dtype))
    b2 = jnp.zeros((1, dp), jnp.float32).at[:, :dz].set(
        params["b2"].reshape(1, dz).astype(jnp.float32))

    # keep = 1.0 where the point participates in the aggregation.
    if mask is None:
        keep = jnp.ones((m, n), jnp.float32)
    else:
        keep = (~mask).astype(jnp.float32).reshape(m, n)

    tb = _pick_tb(m, n)          # TB batch elements (TB*n rows) per grid step
    grid = (m // tb,)

    # Explicit VMEM budget (double-buffered blocks + weights), capped for v7x.
    isz = jnp.dtype(compute_dtype).itemsize
    blk_bytes = tb * n * din * isz + tb * n * 4 + tb * dp * 4
    w_bytes = (din * hp + hp * dp) * isz + (hp + dp) * 4
    vmem_limit = int(min(max(4 * (2 * blk_bytes + 2 * w_bytes), 16 << 20),
                         64 << 20))

    kernel = functools.partial(_deepset_kernel, n=n, agg=agg)

    out = pl.pallas_call(
        kernel,
        out_shape=jax.ShapeDtypeStruct((m, dp), jnp.float32),
        grid_spec=pltpu.PrefetchScalarGridSpec(
            num_scalar_prefetch=0,
            grid=grid,
            in_specs=[
                pl.BlockSpec((tb * n, din), lambda i: (i, 0)),   # z rows
                pl.BlockSpec((tb, n), lambda i: (i, 0)),         # keep mask
                pl.BlockSpec((din, hp), lambda i: (0, 0)),       # w1
                pl.BlockSpec((1, hp), lambda i: (0, 0)),         # b1
                pl.BlockSpec((hp, dp), lambda i: (0, 0)),        # w2
                pl.BlockSpec((1, dp), lambda i: (0, 0)),         # b2
            ],
            out_specs=pl.BlockSpec((tb, dp), lambda i: (i, 0)),  # lane-dense
        ),
        compiler_params=pltpu.CompilerParams(
            dimension_semantics=("parallel",),
            vmem_limit_bytes=vmem_limit),
    )(z, keep, w1, b1, w2, b2)

    return out[:, :dz]


def deepset_reference(params, x, y, mask=None, agg: str = "sum"):
    """Pure-JAX reference mirroring the PyTorch module."""
    z = jnp.concatenate((x, y), axis=-1)
    h = jnp.maximum(z @ params["w1"] + params["b1"][0], 0.0)
    z = h @ params["w2"] + params["b2"][0]            # [m, n, dz]
    if mask is not None:
        z = jnp.where(mask[..., None], jnp.nan, z)
    if agg == "sum":
        return jnp.nansum(z, axis=-2)
    keep = ~jnp.isnan(z)
    return jnp.nansum(z, axis=-2) / jnp.sum(keep, axis=-2)


if __name__ == "__main__":
    m, n, dx, dy, hidden, dz = 2, 8, 16, 16, 32, 32

    key = jax.random.PRNGKey(0)
    kp, kx, ky, km = jax.random.split(key, 4)

    params = init_deepset_params(kp, dx, dy, hidden, dz)
    x = jax.random.normal(kx, (m, n, dx), jnp.float32)
    y = jax.random.normal(ky, (m, n, dy), jnp.float32)
    mask = jax.random.bernoulli(km, 0.25, (m, n))   # True => masked out (nan)

    # sum aggregation with mask
    out = jax.block_until_ready(deepset_forward(params, x, y, mask, agg="sum"))
    ref = deepset_reference(params, x, y, mask, agg="sum")
    assert out.shape == (m, dz)
    assert jnp.allclose(out, ref, atol=1e-4, rtol=1e-4), "sum mismatch vs reference"

    # mean aggregation with mask
    out_m = jax.block_until_ready(deepset_forward(params, x, y, mask, agg="mean"))
    ref_m = deepset_reference(params, x, y, mask, agg="mean")
    assert jnp.allclose(out_m, ref_m, atol=1e-4, rtol=1e-4), "mean mismatch vs reference"

    # mask=None path
    out_n = jax.block_until_ready(deepset_forward(params, x, y, None, agg="sum"))
    ref_n = deepset_reference(params, x, y, None, agg="sum")
    assert jnp.allclose(out_n, ref_n, atol=1e-4, rtol=1e-4), "no-mask mismatch vs reference"

    print("KERNEL_OK")
</pallas_src>

<mosaic_0001>
module attributes {stable_mosaic.version = 11 : i64} {
  func.func @_deepset_kernel(%arg0: i32, %arg1: memref<16x32xf32, #tpu.memory_space<vmem>>, %arg2: memref<2x8xf32, #tpu.memory_space<vmem>>, %arg3: memref<32x128xf32, #tpu.memory_space<vmem>>, %arg4: memref<1x128xf32, #tpu.memory_space<vmem>>, %arg5: memref<128x128xf32, #tpu.memory_space<vmem>>, %arg6: memref<1x128xf32, #tpu.memory_space<vmem>>, %arg7: memref<2x128xf32, #tpu.memory_space<vmem>>) attributes {dimension_semantics = [#tpu.dimension_semantics<parallel>], iteration_bounds = array<i64: 1>, scalar_prefetch = 0 : i64, scratch_operands = 0 : i64, tpu.core_type = #tpu.core_type<tc>, window_params = [{transform_indices = @transform_0, window_bounds = array<i64: 16, 32>}, {transform_indices = @transform_1, window_bounds = array<i64: 2, 8>}, {pipeline_mode = #tpu.pipeline_mode<synchronous>, transform_indices = @transform_2, window_bounds = array<i64: 32, 128>}, {pipeline_mode = #tpu.pipeline_mode<synchronous>, transform_indices = @transform_3, window_bounds = array<i64: 1, 128>}, {pipeline_mode = #tpu.pipeline_mode<synchronous>, transform_indices = @transform_4, window_bounds = array<i64: 128, 128>}, {pipeline_mode = #tpu.pipeline_mode<synchronous>, transform_indices = @transform_5, window_bounds = array<i64: 1, 128>}, {transform_indices = @transform_6, window_bounds = array<i64: 2, 128>}]} {
    %c0 = arith.constant 0 : index
    %c0_0 = arith.constant 0 : index
    %0 = vector.load %arg1[%c0, %c0_0] : memref<16x32xf32, #tpu.memory_space<vmem>>, vector<16x32xf32>
    %c0_1 = arith.constant 0 : index
    %c0_2 = arith.constant 0 : index
    %1 = vector.load %arg3[%c0_1, %c0_2] : memref<32x128xf32, #tpu.memory_space<vmem>>, vector<32x128xf32>
    %cst = arith.constant dense<0.000000e+00> : vector<16x128xf32>
    %2 = tpu.matmul %0, %1, %cst {dimension_numbers = #tpu.dot_dimension_numbers<[1], [0], [0], [1], [0, 0, 1, 1], [], []>} : vector<16x32xf32>, vector<32x128xf32>, vector<16x128xf32> -> vector<16x128xf32>
    %c0_3 = arith.constant 0 : index
    %c0_4 = arith.constant 0 : index
    %3 = vector.load %arg4[%c0_3, %c0_4] : memref<1x128xf32, #tpu.memory_space<vmem>>, vector<1x128xf32>
    %4 = vector.broadcast %3 : vector<1x128xf32> to vector<16x128xf32>
    %5 = arith.addf %2, %4 : vector<16x128xf32>
    %cst_5 = arith.constant 0.000000e+00 : f32
    %6 = vector.broadcast %cst_5 : f32 to vector<16x128xf32>
    %7 = arith.maximumf %5, %6 : vector<16x128xf32>
    %c0_6 = arith.constant 0 : index
    %c0_7 = arith.constant 0 : index
    %8 = vector.load %arg2[%c0_6, %c0_7] : memref<2x8xf32, #tpu.memory_space<vmem>>, vector<2x8xf32>
    %9 = vector.shape_cast %7 : vector<16x128xf32> to vector<2x8x128xf32>
    %10 = vector.shape_cast %8 : vector<2x8xf32> to vector<2x8x1xf32>
    %cst_8 = arith.constant 0.000000e+00 : f32
    %11 = vector.broadcast %cst_8 : f32 to vector<2x8x1xf32>
    %12 = arith.cmpf ogt, %10, %11 : vector<2x8x1xf32>
    %cst_9 = arith.constant 0.000000e+00 : f32
    %13 = vector.shape_cast %12 : vector<2x8x1xi1> to vector<2x8x1xi1>
    %14 = vector.broadcast %13 : vector<2x8x1xi1> to vector<2x8x128xi1>
    %15 = vector.broadcast %cst_9 : f32 to vector<2x8x128xf32>
    %16 = arith.select %14, %9, %15 : vector<2x8x128xi1>, vector<2x8x128xf32>
    %cst_10 = arith.constant dense<0.000000e+00> : vector<2x128xf32>
    %17 = vector.multi_reduction <add>, %16, %cst_10 [1] : vector<2x8x128xf32> to vector<2x128xf32>
    %cst_11 = arith.constant dense<0.000000e+00> : vector<2xf32>
    %18 = vector.multi_reduction <add>, %8, %cst_11 [1] : vector<2x8xf32> to vector<2xf32>
    %19 = vector.shape_cast %18 : vector<2xf32> to vector<2x1xf32>
    %c0_12 = arith.constant 0 : index
    %c0_13 = arith.constant 0 : index
    %20 = vector.load %arg5[%c0_12, %c0_13] : memref<128x128xf32, #tpu.memory_space<vmem>>, vector<128x128xf32>
    %cst_14 = arith.constant dense<0.000000e+00> : vector<2x128xf32>
    %21 = tpu.matmul %17, %20, %cst_14 {dimension_numbers = #tpu.dot_dimension_numbers<[1], [0], [0], [1], [0, 0, 1, 1], [], []>} : vector<2x128xf32>, vector<128x128xf32>, vector<2x128xf32> -> vector<2x128xf32>
    %c0_15 = arith.constant 0 : index
    %c0_16 = arith.constant 0 : index
    %22 = vector.load %arg6[%c0_15, %c0_16] : memref<1x128xf32, #tpu.memory_space<vmem>>, vector<1x128xf32>
    %23 = vector.broadcast %19 : vector<2x1xf32> to vector<2x128xf32>
    %24 = vector.broadcast %22 : vector<1x128xf32> to vector<2x128xf32>
    %25 = arith.mulf %23, %24 : vector<2x128xf32>
    %26 = arith.addf %21, %25 : vector<2x128xf32>
    %c0_17 = arith.constant 0 : index
    %c0_18 = arith.constant 0 : index
    %27 = vector.load %arg7[%c0_17, %c0_18] : memref<2x128xf32, #tpu.memory_space<vmem>>, vector<2x128xf32>
    tpu.vector_store %arg7[%c0_17, %c0_18], %26 {strides = array<i32>} : memref<2x128xf32, #tpu.memory_space<vmem>>, vector<2x128xf32>,
    return
  }
  func.func @transform_0(%arg0: i32) -> (i32, i32) {
    %c0_i32 = arith.constant 0 : i32
    %c0_i32_0 = arith.constant 0 : i32
    return %arg0, %c0_i32 : i32, i32
  }
  func.func @transform_1(%arg0: i32) -> (i32, i32) {
    %c0_i32 = arith.constant 0 : i32
    %c0_i32_0 = arith.constant 0 : i32
    return %arg0, %c0_i32 : i32, i32
  }
  func.func @transform_2(%arg0: i32) -> (i32, i32) {
    %c0_i32 = arith.constant 0 : i32
    %c0_i32_0 = arith.constant 0 : i32
    %c0_i32_1 = arith.constant 0 : i32
    return %c0_i32, %c0_i32_0 : i32, i32
  }
  func.func @transform_3(%arg0: i32) -> (i32, i32) {
    %c0_i32 = arith.constant 0 : i32
    %c0_i32_0 = arith.constant 0 : i32
    %c0_i32_1 = arith.constant 0 : i32
    return %c0_i32, %c0_i32_0 : i32, i32
  }
  func.func @transform_4(%arg0: i32) -> (i32, i32) {
    %c0_i32 = arith.constant 0 : i32
    %c0_i32_0 = arith.constant 0 : i32
    %c0_i32_1 = arith.constant 0 : i32
    return %c0_i32, %c0_i32_0 : i32, i32
  }
  func.func @transform_5(%arg0: i32) -> (i32, i32) {
    %c0_i32 = arith.constant 0 : i32
    %c0_i32_0 = arith.constant 0 : i32
    %c0_i32_1 = arith.constant 0 : i32
    return %c0_i32, %c0_i32_0 : i32, i32
  }
  func.func @transform_6(%arg0: i32) -> (i32, i32) {
    %c0_i32 = arith.constant 0 : i32
    %c0_i32_0 = arith.constant 0 : i32
    return %arg0, %c0_i32 : i32, i32
  }
}

</mosaic_0001>

<bundles_post_ra>
// kernel: tpu_custom_call.1
= control target key start
LH: loop header
LB: loop body
LE: loop exit
PB: predicated region body
PF: predicated region fallthrough
CT: control target
= control target key end

     0   :  { %11 = vsyncpa [#allocation3], 0  ;;  %s644_s0 = inlined_call_operand.hbm [shape: f32[16,32], index: 0, kind: input, shape index: {}]   ;;  %s645_s1 = inlined_call_operand.vmem [shape: f32[2,8], index: 1, kind: input, shape index: {}]   ;;  %s646_s2 = inlined_call_operand.hbm [shape: f32[32,128], index: 2, kind: input, shape index: {}]   ;;  %s647_s3 = inlined_call_operand.vmem [shape: f32[1,128], index: 3, kind: input, shape index: {}]   ;;  %s648_s4 = inlined_call_operand.hbm [shape: f32[128,128], index: 4, kind: input, shape index: {}]   ;;  %s649_s5 = inlined_call_operand.vmem [shape: f32[1,128], index: 5, kind: input, shape index: {}]   ;;  %s650_s6 = inlined_call_operand.hbm [shape: f32[2,128], index: 6, kind: output, shape index: {}]  }
   0x1   :  { %12 = vsyncpa [#allocation6], 0 }
   0x2   :  { %13 = vsyncpa [#allocation4], 0  ;;  %s525_s21 = smov [#allocation5]   ;;  %s526_s23 = smov [#allocation2]  }
   0x3   :  { %s33_s22 = sshll.u32 %s525_s21, 4  ;;  %s19_s24 = sshll.u32 %s526_s23, 4  ;;  %s34_s22 = int_to_ptr.vmem [resolvable:$true] %s33_s22  ;;  %s569_s24 = int_to_ptr.vmem [resolvable:$true] %s19_s24 }
   0x4   :  { %s431_s27 = scalar_lea.hbm %s646_s2, 512 }
   0x5   :  { %p432_p0 = scmp.ne.s32.totalorder %s646_s2, %s431_s27  ;;  %p435_p1 = scmp.lt.u32.totalorder %s431_s27, %s646_s2 }
   0x7   :  { %p437_p2 = pnand %p435_p1, %p432_p0 }
   0x9   :  { %440 = shalt.err (!%p437_p2)
}
   0xa   :  { %s441_s8 = scalar_lea.vmem %s34_s22, 512  ;;  %p446_p4 = scmp.lt.s32.totalorder %s34_s22, %s34_s22 }
   0xb   :  { %p442_p3 = scmp.ne.s32.totalorder %s34_s22, %s441_s8  ;;  %p447_p5 = scmp.lt.s32.totalorder %s441_s8, %s441_s8 }
   0xd   :  { %p448_p6 = por %p447_p5, %p446_p4 }
   0xf   :  { %p449_p7 = pnand %p448_p6, %p442_p3 }
  0x11   :  { %452 = shalt.err (!%p449_p7)
}
  0x12   :  { %s527_s9 = smov 128   ;;  %s528_s10 = smov 8  }
  0x13   :  { %39 = dma.hbm_to_vmem [thread:$0]  %s646_s2, 512, %s34_s22, [#allocation6], %s527_s9, %s527_s9, %s528_s10  }
  0x14   :  { %s453_s15 = scalar_lea.hbm %s644_s0, 256 }
  0x15   :  { %p454_p8 = scmp.ne.s32.totalorder %s644_s0, %s453_s15  ;;  %p457_p9 = scmp.lt.u32.totalorder %s453_s15, %s644_s0 }
  0x17   :  { %p459_p10 = pnand %p457_p9, %p454_p8 }
  0x19   :  { %462 = shalt.err (!%p459_p10)
}
  0x1a   :  { %s463_s20 = scalar_lea.vmem %s569_s24, 256  ;;  %p468_p12 = scmp.lt.s32.totalorder %s569_s24, %s569_s24 }
  0x1b   :  { %p464_p11 = scmp.ne.s32.totalorder %s569_s24, %s463_s20  ;;  %p469_p13 = scmp.lt.s32.totalorder %s463_s20, %s463_s20 }
  0x1d   :  { %p470_p0 = por %p469_p13, %p468_p12 }
  0x1f   :  { %p471_p1 = pnand %p470_p0, %p464_p11 }
  0x21   :  { %474 = shalt.err (!%p471_p1)
}
  0x22   :  { %25 = dma.hbm_to_vmem [thread:$0]  %s644_s0, 256, %s569_s24, [#allocation3], %s527_s9, %s527_s9, %s528_s10  }
  0x23   :  { %s529_s22 = smov [#allocation7]   ;;  %s475_s27 = scalar_lea.hbm %s648_s4, 2048 }
  0x24   :  { %s47_s23 = sshll.u32 %s529_s22, 4  ;;  %p476_p2 = scmp.ne.s32.totalorder %s648_s4, %s475_s27  ;;  %s48_s23 = int_to_ptr.vmem [resolvable:$true] %s47_s23 }
  0x25   :  { %p479_p3 = scmp.lt.u32.totalorder %s475_s27, %s648_s4 }
  0x27   :  { %p481_p4 = pnand %p479_p3, %p476_p2 }
  0x29   :  { %484 = shalt.err (!%p481_p4)
}
  0x2a   :  { %s485_s8 = scalar_lea.vmem %s48_s23, 2048  ;;  %p490_p6 = scmp.lt.s32.totalorder %s48_s23, %s48_s23 }
  0x2b   :  { %p486_p5 = scmp.ne.s32.totalorder %s48_s23, %s485_s8  ;;  %p491_p7 = scmp.lt.s32.totalorder %s485_s8, %s485_s8 }
  0x2d   :  { %p492_p8 = por %p491_p7, %p490_p6 }
  0x2f   :  { %p493_p9 = pnand %p492_p8, %p486_p5 }
  0x31   :  { %496 = shalt.err (!%p493_p9)
}
  0x32   :  { %53 = dma.hbm_to_vmem [thread:$0]  %s648_s4, 2048, %s48_s23, [#allocation6], %s527_s9, %s527_s9, %s528_s10  }
  0x33   :  { %519 = dma.done.wait [#allocation3], 256  }
  0x34   :  { %520 = vsyncadd [#allocation3], 4294967040 }
  0x35   :  { %521 = dma.done.wait [#allocation6], 2560  }
  0x36   :  { %522 = vsyncadd [#allocation6], 4294964736  ;;  %v163_v0 = vlaneseq  ;;  %v530_v1 = vmov 0.0|0.0   ;;  %vm78_vm0 = vcmask 261120   ;;  %v67_v4 = vld [vmem:[#allocation5] sm:$0xff]  ;;  %v68_v5 = vld [vmem:[#allocation5 + $0x8] sm:$0xff] }
  0x37   :  { %398 = vmatprep.subr.bf16.mxu1 %v530_v1  ;;  %v69_v6 = vld [vmem:[#allocation5 + $0x10] sm:$0xff]  ;;  %v390_v7 = vpack.c.bf16 %v68_v5, %v67_v4  ;;  %v70_v8 = vld [vmem:[#allocation5 + $0x18] sm:$0xff]  ;;  %v201_v13 = vld [vmem:[#allocation7] sm:$0xff]  ;;  %vm531_vm1 = vmmov 0   ;;  %v532_v40 = vmov 0.0   ;;  %vm197_vm2 = vcmask 58368  }
  0x38   :  { %v164_v2 = vshrl.u32 %v163_v0, 7  ;;  %v65_v9 = vld [vmem:[#allocation2] sm:$0xff]  ;;  %v394_v11 = vpack.c.bf16 %v70_v8, %v69_v6  ;;  %v202_v14 = vld [vmem:[#allocation7 + $0x8] sm:$0xff]  ;;  %v204_v18 = vld [vmem:[#allocation7 + $0x18] sm:$0xff]  ;;  %387 = vmatprep.mubr.msk.f32.mxu1 %vm531_vm1, %v532_v40  ;;  %vm227_vm5 = vcmask 1041409   ;;  %s533_s12 = smov [#allocation8]  }
  0x39   :  { %352 = vmatprep.mubr.msk.f32.mxu0 %vm78_vm0, %v65_v9  ;;  %v162_v12 = vld [vmem:[%s645_s1] sm:$0x3]  ;;  %391 = vmatprep.subr.bf16.mxu0 %v390_v7  ;;  %v399_v16 = vpack.c.bf16 %v202_v14, %v201_v13  ;;  %v205_v21 = vld [vmem:[#allocation7 + $0x20] sm:$0xff]  ;;  %v206_v22 = vld [vmem:[#allocation7 + $0x28] sm:$0xff]  ;;  %s307_s13 = sshll.u32 %s533_s12, 4  ;;  %s308_s13 = int_to_ptr.vmem [resolvable:$true] %s307_s13 }
  0x3a   :  { %v165_v3 = vsub.s32 0, %v164_v2  ;;  %v172_v10 = vsub.s32 1, %v164_v2  ;;  %v203_v17 = vld [vmem:[#allocation7 + $0x10] sm:$0xff]  ;;  %393 = vmatpush3.bf16.msra.mxu0 %v390_v7  ;;  %v66_v23 = vld [vmem:[#allocation2 + $0x8] sm:$0xff]  ;;  %v405_v24 = vpack.c.bf16 %v206_v22, %v205_v21  ;;  %v209_v28 = vld [vmem:[#allocation7 + $0x40] sm:$0xff]  ;;  %v198_v41 = vsel %vm197_vm2, %v162_v12, 0.0  ;;  %p502_p11 = scmp.lt.s32.totalorder %s308_s13, %s308_s13 }
  0x3b   :  { %395 = vmatprep.subr.bf16.mxu0 %v394_v11  ;;  %400 = vmatpush3.bf16.msra.mxu1 %v399_v16  ;;  %v402_v20 = vpack.c.bf16 %v204_v18, %v203_v17  ;;  %v207_v25 = vld [vmem:[#allocation7 + $0x30] sm:$0xff]  ;;  %v208_v26 = vld [vmem:[#allocation7 + $0x38] sm:$0xff]  ;;  %v210_v29 = vld [vmem:[#allocation7 + $0x48] sm:$0xff]  ;;  %s497_s14 = scalar_lea.vmem %s308_s13, 32 }
  0x3c   :  { %v166_v15 = vrot.slane %v162_v12, %v165_v3  ;;  %v173_v19 = vrot.slane %v162_v12, %v172_v10  ;;  %401 = vmatprep.subr.bf16.mxu1 %v530_v1  ;;  %v408_v27 = vpack.c.bf16 %v208_v26, %v207_v25  ;;  %v411_v30 = vpack.c.bf16 %v210_v29, %v209_v28  ;;  %v211_v31 = vld [vmem:[#allocation7 + $0x50] sm:$0xff]  ;;  %v212_v32 = vld [vmem:[#allocation7 + $0x58] sm:$0xff]  ;;  %v213_v34 = vld [vmem:[#allocation7 + $0x60] sm:$0xff]  ;;  %p498_p10 = scmp.ne.s32.totalorder %s308_s13, %s497_s14  ;;  %p503_p12 = scmp.lt.s32.totalorder %s497_s14, %s497_s14 }
  0x3d   :  { %v414_v33 = vpack.c.bf16 %v212_v32, %v211_v31  ;;  %v214_v35 = vld [vmem:[#allocation7 + $0x68] sm:$0xff]  ;;  %v215_v37 = vld [vmem:[#allocation7 + $0x70] sm:$0xff]  ;;  %v216_v38 = vld [vmem:[#allocation7 + $0x78] sm:$0xff]  ;;  %199 = vadd.xlane.f32.xlu1 %v198_v41 }
  0x3e   :  { %168 = vbcast.lane.b32.xlu0 %v166_v15, 256  ;;  %397 = vmatpush3.bf16.msra.mxu0 %v394_v11  ;;  %v417_v36 = vpack.c.bf16 %v214_v35, %v213_v34  ;;  %v420_v39 = vpack.c.bf16 %v216_v38, %v215_v37  ;;  %v317_v43 = vld [vmem:[%s647_s3] ss:$0 sm:$0xff]  ;;  %p504_p13 = por %p503_p12, %p502_p11 }
  0x3f   :  { %403 = vmatpush3.bf16.msra.mxu1 %v402_v20  ;;  %v320_v2 = vld [vmem:[%s649_s5] ss:$0 sm:$0xff] }
  0x40   :  { %404 = vmatprep.subr.bf16.mxu1 %v530_v1  ;;  %p505_p0 = pnand %p504_p13, %p498_p10 }
  0x41   :  { %353 = vmatmul.mubr.msk.f32.vlgmr.msra.gmra.mrb[0].mxu0 %vm78_vm0, %v66_v23 }
  0x42   :  { %175 = vbcast.lane.b32.xlu0 %v173_v19, 256 }
  0x43   :  { %406 = vmatpush3.bf16.msra.mxu1 %v405_v24 }
  0x44   :  { %407 = vmatprep.subr.bf16.mxu1 %v530_v1 }
  0x47   :  { %409 = vmatpush3.bf16.msra.mxu1 %v408_v27 }
  0x48   :  { %410 = vmatprep.subr.bf16.mxu1 %v530_v1 }
  0x4b   :  { %412 = vmatpush3.bf16.msra.mxu1 %v411_v30 }
  0x4c   :  { %413 = vmatprep.subr.bf16.mxu1 %v530_v1 }
  0x4f   :  { %415 = vmatpush3.bf16.msra.mxu1 %v414_v33 }
  0x50   :  { %416 = vmatprep.subr.bf16.mxu1 %v530_v1 }
  0x53   :  { %418 = vmatpush3.bf16.msra.mxu1 %v417_v36 }
  0x54   :  { %419 = vmatprep.subr.bf16.mxu1 %v530_v1 }
  0x57   :  { %421 = vmatpush3.bf16.msra.mxu1 %v420_v39 }
  0xb0   :  { %v169_v42 = vpop.permute.xlu0 %168 }
  0xb1   :  { %vm177_vm4 = vcmp.gt.f32.partialorder %v169_v42, 0.0 }
  0xb4   :  { %v176_v44 = vpop.permute.xlu0 %175 }
  0xb5   :  { %vm178_vm3 = vcmp.gt.f32.partialorder %v176_v44, 0.0 }
  0xca   :  { %v200_v3 = vpop.xlane.xlu1 %199 }
  0xcb   :  { %v224_v4 = vmul.f32 %v320_v2, %v200_v3 }
 0x114   :  { %v354_v45 = vpop.f32.mrb[0].mxu0 }
 0x115   :  { %v157_v46 = vadd.f32 %v354_v45, %v317_v43  ;;  %v151_v47 = vpop.f32.mrb[1].mxu0 }
 0x116   :  { %v152_v48 = vadd.f32 %v317_v43, %v151_v47 }
 0x117   :  { %v161_v49 = vmax.f32 %v157_v46, 0.0 }
 0x118   :  { %v160_v50 = vmax.f32 %v152_v48, 0.0 }
 0x119   :  { %v184_v51 = vsel %vm178_vm3, %v161_v49, 0.0 }
 0x11a   :  { %v183_v52 = vsel %vm177_vm4, %v160_v50, 0.0  ;;  %v191_v53 = vrot.slane %v184_v51, 4 }
 0x11b   :  { %v185_v54 = vrot.slane %v183_v52, 4 }
 0x11c   :  { %v192_v55 = vadd.f32 %v191_v53, %v184_v51 }
 0x11d   :  { %v186_v56 = vadd.f32 %v185_v54, %v183_v52 }
 0x11e   :  { %v193_v57 = vrot.slane %v192_v55, 2 }
 0x11f   :  { %v187_v58 = vrot.slane %v186_v56, 2 }
 0x120   :  { %v194_v59 = vadd.f32 %v193_v57, %v192_v55 }
 0x121   :  { %v188_v60 = vadd.f32 %v187_v58, %v186_v56 }
 0x122   :  { %v195_v61 = vrot.slane %v194_v59, 1 }
 0x123   :  { %v189_v62 = vrot.slane %v188_v60, 1 }
 0x124   :  { %v196_v63 = vadd.f32 %v195_v61, %v194_v59 }
 0x125   :  { %v190_v0 = vadd.f32 %v189_v62, %v188_v60 }
 0x127   :  { %v228_v1 = vsel %vm227_vm5, %v196_v63, %v190_v0 }
 0x128   :  { %388 = vmatmul.mubr.f32.vlgmr.msra.gmra.mrb[0].mxu1 %v228_v1 }
 0x1fb   :  { %v296_v5 = vpop.f32.mrb[0].mxu1 }
 0x1fc   :  { %v297_v6 = vadd.f32 %v296_v5, %v224_v4  ;;  %v389_v7 = vpop.f32.mrb[1].mxu1 }
 0x1fe   :  { %300 = vst [vmem:[#allocation8] sm:$0x3] %v297_v6 }
 0x1ff   :  { %508 = shalt.err (!%p505_p0)
}
 0x200   :  { %s509_s5 = scalar_lea.hbm %s650_s6, 32 }
 0x201   :  { %p510_p1 = scmp.ne.s32.totalorder %s650_s6, %s509_s5  ;;  %p513_p2 = scmp.lt.u32.totalorder %s509_s5, %s650_s6 }
 0x203   :  { %p515_p3 = pnand %p513_p2, %p510_p1 }
 0x205   :  { %518 = shalt.err (!%p515_p3)
}
 0x206   :  { %310 = dma.vmem_to_hbm [thread:$0]  %s308_s13, 32, %s650_s6, [#allocation4]  }
 0x207   :  { %523 = dma.done.wait [#allocation4], 32  }
 0x208   :  { %524 = vsyncadd [#allocation4], 4294967264 }
 0x209   :  { %314 = vsyncpa [#allocation3], 1 }
 0x20a   :  { %315 = vsyncpa [#allocation6], 1 }
 0x20b   :  { %316 = vsyncpa [#allocation4], 1 }

</bundles_post_ra>
